<compile_context>
chip_gen: v6e
topology: v6e:2x2x1
jax: 0.10.0
libtpu: 0.0.40
codegen_flags: <defaults>
</compile_context>

<pallas_src>
import functools

import jax
import jax.numpy as jnp
from jax import lax
from jax.experimental import pallas as pl
from jax.experimental.pallas import tpu as pltpu


def _round_up(x, m):
    return ((x + m - 1) // m) * m


def _pick_tile(size, candidates):
    for t in candidates:
        if size % t == 0:
            return t
    return size


_DIM_SEM = pltpu.CompilerParams(dimension_semantics=("parallel", "arbitrary"))


# ---------------------------------------------------------------------------
# Kernel 1: dinv = rsqrt(rowsum(A) + 1)   (degree of A + I, symmetric A)
# Tiled reduction over the column axis; computed once per forward pass.
# ---------------------------------------------------------------------------
def _dinv_kernel(a_ref, o_ref, acc_ref):
    k = pl.program_id(1)

    @pl.when(k == 0)
    def _():
        acc_ref[...] = jnp.zeros_like(acc_ref)

    acc_ref[...] += jnp.sum(a_ref[...].astype(jnp.float32), axis=1, keepdims=True)

    @pl.when(k == pl.num_programs(1) - 1)
    def _():
        # degree of A + I (adjacency assumed to have an empty diagonal)
        o_ref[...] = lax.rsqrt(acc_ref[...] + 1.0)


def compute_dinv(adj_pad, *, tm, tk):
    npad = adj_pad.shape[0]
    return pl.pallas_call(
        _dinv_kernel,
        out_shape=jax.ShapeDtypeStruct((npad, 1), jnp.float32),
        grid=(npad // tm, npad // tk),
        in_specs=[pl.BlockSpec((tm, tk), lambda i, k: (i, k))],
        out_specs=pl.BlockSpec((tm, 1), lambda i, k: (i, 0)),
        scratch_shapes=[pltpu.VMEM((tm, 1), jnp.float32)],
        compiler_params=_DIM_SEM,
    )(adj_pad)


# ---------------------------------------------------------------------------
# Kernel 2: Z' = dinv ⊙ (X @ W)   (tiled over rows and the F_in reduction)
# bf16 MXU inputs, f32 accumulation, bf16 output for the aggregation matmul.
# ---------------------------------------------------------------------------
def _xw_kernel(x_ref, w_ref, dinv_ref, o_ref, acc_ref):
    k = pl.program_id(1)

    @pl.when(k == 0)
    def _():
        acc_ref[...] = jnp.zeros_like(acc_ref)

    acc_ref[...] += jnp.dot(x_ref[...].astype(jnp.bfloat16), w_ref[...],
                            preferred_element_type=jnp.float32)

    @pl.when(k == pl.num_programs(1) - 1)
    def _():
        o_ref[...] = (dinv_ref[...] * acc_ref[...]).astype(o_ref.dtype)


def xw_scaled(x_pad, w_pad, dinv, *, tm):
    npad, fin_pad = x_pad.shape
    fout_pad = w_pad.shape[1]
    tkf = _pick_tile(fin_pad, (512, 256, 128))
    return pl.pallas_call(
        _xw_kernel,
        out_shape=jax.ShapeDtypeStruct((npad, fout_pad), jnp.bfloat16),
        grid=(npad // tm, fin_pad // tkf),
        in_specs=[
            pl.BlockSpec((tm, tkf), lambda i, k: (i, k)),
            pl.BlockSpec((tkf, fout_pad), lambda i, k: (k, 0)),
            pl.BlockSpec((tm, 1), lambda i, k: (i, 0)),
        ],
        out_specs=pl.BlockSpec((tm, fout_pad), lambda i, k: (i, 0)),
        scratch_shapes=[pltpu.VMEM((tm, fout_pad), jnp.float32)],
        compiler_params=_DIM_SEM,
    )(x_pad, w_pad, dinv)


# ---------------------------------------------------------------------------
# Kernel 3: H = dinv ⊙ (A @ Z' + Z') + b  -> LayerNorm -> ReLU -> (+residual)
# Tiled over output-row tiles (parallel) and the N reduction (arbitrary, last);
# the self-loop term seeds the accumulator, and the whole epilogue is fused
# under the last reduction step.
# ---------------------------------------------------------------------------
def _agg_kernel(a_ref, zk_ref, zs_ref, dinv_ref, b_ref, g_ref, bt_ref, *rest,
                f_out, relu, layer_norm, add_residual):
    if add_residual:
        xprev_ref, o_ref, acc_ref = rest
    else:
        o_ref, acc_ref = rest

    k = pl.program_id(1)

    @pl.when(k == 0)
    def _():
        # Seed with the self-loop contribution of (A + I): Z' rows of this tile.
        acc_ref[...] = zs_ref[...].astype(jnp.float32)

    acc_ref[...] += jnp.dot(a_ref[...], zk_ref[...],
                            preferred_element_type=jnp.float32)

    @pl.when(k == pl.num_programs(1) - 1)
    def _():
        h = dinv_ref[...] * acc_ref[...] + b_ref[...]
        if layer_norm:
            fout_pad = h.shape[-1]
            inv_f = 1.0 / f_out
            if f_out == fout_pad:
                mean = jnp.sum(h, axis=-1, keepdims=True) * inv_f
                c = h - mean
                var = jnp.sum(c * c, axis=-1, keepdims=True) * inv_f
            else:
                # Padded lanes are zero but must be excluded from mean/variance.
                mask = lax.broadcasted_iota(jnp.int32, h.shape, 1) < f_out
                mean = jnp.sum(jnp.where(mask, h, 0.0), axis=-1, keepdims=True) * inv_f
                c = h - mean
                var = jnp.sum(jnp.where(mask, c * c, 0.0), axis=-1, keepdims=True) * inv_f
            h = c * lax.rsqrt(var + 1e-5) * g_ref[...] + bt_ref[...]
        # TODO(synk): F.dropout is identity in eval mode; training would need pltpu.prng_*.
        if relu:
            h = jnp.maximum(h, 0.0)
        if add_residual:
            h = h + xprev_ref[...]
        o_ref[...] = h.astype(o_ref.dtype)


def gcn_aggregate(adj_pad, z_scaled, dinv, b, gamma, beta, x_prev, *,
                  tm, tk, f_out, relu, layer_norm, add_residual):
    npad = adj_pad.shape[0]
    fout_pad = z_scaled.shape[1]
    kernel = functools.partial(_agg_kernel, f_out=f_out, relu=relu,
                               layer_norm=layer_norm, add_residual=add_residual)
    in_specs = [
        pl.BlockSpec((tm, tk), lambda i, k: (i, k)),            # A tile (bf16, 0/1)
        pl.BlockSpec((tk, fout_pad), lambda i, k: (k, 0)),      # Z' reduction operand
        pl.BlockSpec((tm, fout_pad), lambda i, k: (i, 0)),      # Z' self-loop rows
        pl.BlockSpec((tm, 1), lambda i, k: (i, 0)),             # dinv rows
        pl.BlockSpec((1, fout_pad), lambda i, k: (0, 0)),       # bias
        pl.BlockSpec((1, fout_pad), lambda i, k: (0, 0)),       # gamma
        pl.BlockSpec((1, fout_pad), lambda i, k: (0, 0)),       # beta
    ]
    args = [adj_pad, z_scaled, z_scaled, dinv, b, gamma, beta]
    if add_residual:
        in_specs.append(pl.BlockSpec((tm, fout_pad), lambda i, k: (i, 0)))
        args.append(x_prev)
    return pl.pallas_call(
        kernel,
        out_shape=jax.ShapeDtypeStruct((npad, fout_pad), jnp.float32),
        grid=(npad // tm, npad // tk),
        in_specs=in_specs,
        out_specs=pl.BlockSpec((tm, fout_pad), lambda i, k: (i, 0)),
        scratch_shapes=[pltpu.VMEM((tm, fout_pad), jnp.float32)],
        compiler_params=_DIM_SEM,
    )(*args)


# ---------------------------------------------------------------------------
# Model wrapper (parameter setup, padding, per-layer kernel calls).
# ---------------------------------------------------------------------------
class GCNPallas:
    def __init__(self, in_channels, hidden_channels, out_channels, num_layers,
                 dropout, residual=False, layer_norm=True, relu=True, *, key):
        self.relu = relu
        self.residual = residual
        self.layer_norm = layer_norm
        self.dropout = dropout  # inference: identity

        if num_layers == 1:
            dims = [in_channels, out_channels]
        else:
            dims = [in_channels] + [hidden_channels] * (num_layers - 1) + [out_channels]
        self.dims = dims

        self.weights, self.biases, self.gammas, self.betas = [], [], [], []
        for i in range(num_layers):
            fin, fout = dims[i], dims[i + 1]
            fin_p, fout_p = _round_up(fin, 128), _round_up(fout, 128)
            key, wk = jax.random.split(key)
            limit = (6.0 / (fin + fout)) ** 0.5                       # glorot uniform
            w = jax.random.uniform(wk, (fin, fout), jnp.float32, -limit, limit)
            w_pad = jnp.zeros((fin_p, fout_p), jnp.float32).at[:fin, :fout].set(w)
            self.weights.append(w_pad.astype(jnp.bfloat16))
            self.biases.append(jnp.zeros((1, fout_p), jnp.float32))
            # NB: the torch module registers LayerNorm(hidden_channels) for every
            # conv, so out_channels == hidden_channels as in the demo below.
            gamma = jnp.zeros((1, fout_p), jnp.float32).at[:, :fout].set(1.0)
            self.gammas.append(gamma)
            self.betas.append(jnp.zeros((1, fout_p), jnp.float32))

    def __call__(self, x, adj):
        n = x.shape[0]
        npad = _round_up(n, 128)
        tm = _pick_tile(npad, (256, 128))
        tk = _pick_tile(npad, (512, 256, 128))

        # 0/1 adjacency is exact in bf16 and halves the dominant N^2 HBM traffic.
        adj_pad = jnp.pad(adj, ((0, npad - n), (0, npad - n))).astype(jnp.bfloat16)
        dinv = compute_dinv(adj_pad, tm=tm, tk=tk)                    # [npad, 1], once

        fin0_p = _round_up(self.dims[0], 128)
        x_pad = jnp.pad(x, ((0, npad - n), (0, fin0_p - x.shape[1])))

        for i, (w, b, g, bt) in enumerate(zip(self.weights, self.biases,
                                              self.gammas, self.betas)):
            fin, fout = self.dims[i], self.dims[i + 1]
            add_res = self.residual and (fin == fout)
            z = xw_scaled(x_pad, w, dinv, tm=tm)                      # bf16 [npad, fout_p]
            x_pad = gcn_aggregate(adj_pad, z, dinv, b, g, bt, x_pad,
                                  tm=tm, tk=tk, f_out=fout, relu=self.relu,
                                  layer_norm=self.layer_norm, add_residual=add_res)
        return x_pad[:n, :self.dims[-1]]


# ---------------------------------------------------------------------------
# Pure-JAX reference mirroring the kernel's bf16 casts (for correctness check).
# ---------------------------------------------------------------------------
def gcn_reference(x, adj, model):
    dinv = lax.rsqrt(adj.astype(jnp.bfloat16).astype(jnp.float32).sum(1) + 1.0)[:, None]
    a32 = adj.astype(jnp.bfloat16).astype(jnp.float32)
    h = x
    for i in range(len(model.weights)):
        fin, fout = model.dims[i], model.dims[i + 1]
        w = model.weights[i][:fin, :fout].astype(jnp.float32)
        b = model.biases[i][0, :fout]
        g = model.gammas[i][0, :fout]
        bt = model.betas[i][0, :fout]
        z = dinv * (h.astype(jnp.bfloat16).astype(jnp.float32) @ w)
        z = z.astype(jnp.bfloat16).astype(jnp.float32)
        hcur = dinv * (a32 @ z + z) + b
        if model.layer_norm:
            mean = hcur.mean(-1, keepdims=True)
            var = ((hcur - mean) ** 2).mean(-1, keepdims=True)
            hcur = (hcur - mean) * lax.rsqrt(var + 1e-5) * g + bt
        if model.relu:
            hcur = jnp.maximum(hcur, 0.0)
        if model.residual and fin == fout:
            h = h + hcur
        else:
            h = hcur
    return h


if __name__ == "__main__":
    key = jax.random.PRNGKey(0)
    k_x, k_a, k_p = jax.random.split(key, 3)

    N, IN_C, HID_C, OUT_C, LAYERS = 64, 16, 32, 32, 3

    # Node features [N, IN_C]
    x = jax.random.normal(k_x, (N, IN_C), jnp.float32)

    # Random symmetric dense adjacency (empty diagonal; self-loops added in-kernel).
    a = (jax.random.uniform(k_a, (N, N)) < 0.1).astype(jnp.float32)
    adj = jnp.maximum(a, a.T) * (1.0 - jnp.eye(N, dtype=jnp.float32))

    model = GCNPallas(IN_C, HID_C, OUT_C, LAYERS, dropout=0.5,
                      residual=True, layer_norm=True, relu=True, key=k_p)

    out = model(x, adj)
    jax.block_until_ready(out)
    assert out.shape == (N, OUT_C) and out.dtype == jnp.float32

    ref = gcn_reference(x, adj, model)
    assert bool(jnp.allclose(out, ref, rtol=2e-2, atol=2e-2)), "mismatch vs reference"
    print("KERNEL_OK")
</pallas_src>

<mosaic_0001>
module attributes {stable_mosaic.version = 11 : i64} {
  func.func @_dinv_kernel(%arg0: i32, %arg1: i32, %arg2: memref<128x128xbf16, #tpu.memory_space<vmem>>, %arg3: memref<128x1xf32, #tpu.memory_space<vmem>>, %arg4: memref<128x1xf32, #tpu.memory_space<vmem>>) attributes {dimension_semantics = [#tpu.dimension_semantics<parallel>, #tpu.dimension_semantics<arbitrary>], iteration_bounds = array<i64: 1, 1>, scalar_prefetch = 0 : i64, scratch_operands = 1 : i64, tpu.core_type = #tpu.core_type<tc>, window_params = [{transform_indices = @transform_0, window_bounds = array<i64: 128, 128>}, {transform_indices = @transform_1, window_bounds = array<i64: 128, 1>}]} {
    %c0_i32 = arith.constant 0 : i32
    %0 = arith.cmpi eq, %arg1, %c0_i32 : i32
    %1 = arith.extui %0 : i1 to i32
    %c0_i32_0 = arith.constant 0 : i32
    %2 = arith.cmpi ne, %1, %c0_i32_0 : i32
    scf.if %2 {
      %cst_8 = arith.constant 0.000000e+00 : f32
      %13 = vector.broadcast %cst_8 : f32 to vector<128x1xf32>
      %c0_9 = arith.constant 0 : index
      %c0_10 = arith.constant 0 : index
      %14 = vector.load %arg4[%c0_9, %c0_10] : memref<128x1xf32, #tpu.memory_space<vmem>>, vector<128x1xf32>
      tpu.vector_store %arg4[%c0_9, %c0_10], %13 {strides = array<i32>} : memref<128x1xf32, #tpu.memory_space<vmem>>, vector<128x1xf32>,
    } else {
    }
    %c0 = arith.constant 0 : index
    %c0_1 = arith.constant 0 : index
    %3 = vector.load %arg4[%c0, %c0_1] : memref<128x1xf32, #tpu.memory_space<vmem>>, vector<128x1xf32>
    %c0_2 = arith.constant 0 : index
    %c0_3 = arith.constant 0 : index
    %4 = vector.load %arg2[%c0_2, %c0_3] : memref<128x128xbf16, #tpu.memory_space<vmem>>, vector<128x128xbf16>
    %5 = arith.extf %4 : vector<128x128xbf16> to vector<128x128xf32>
    %cst = arith.constant dense<0.000000e+00> : vector<128xf32>
    %6 = vector.multi_reduction <add>, %5, %cst [1] : vector<128x128xf32> to vector<128xf32>
    %7 = vector.shape_cast %6 : vector<128xf32> to vector<128x1xf32>
    %8 = arith.addf %3, %7 : vector<128x1xf32>
    %c0_4 = arith.constant 0 : index
    %c0_5 = arith.constant 0 : index
    %9 = vector.load %arg4[%c0_4, %c0_5] : memref<128x1xf32, #tpu.memory_space<vmem>>, vector<128x1xf32>
    tpu.vector_store %arg4[%c0_4, %c0_5], %8 {strides = array<i32>} : memref<128x1xf32, #tpu.memory_space<vmem>>, vector<128x1xf32>,
    %c0_i32_6 = arith.constant 0 : i32
    %10 = arith.cmpi eq, %arg1, %c0_i32_6 : i32
    %11 = arith.extui %10 : i1 to i32
    %c0_i32_7 = arith.constant 0 : i32
    %12 = arith.cmpi ne, %11, %c0_i32_7 : i32
    scf.if %12 {
      %c0_8 = arith.constant 0 : index
      %c0_9 = arith.constant 0 : index
      %13 = vector.load %arg4[%c0_8, %c0_9] : memref<128x1xf32, #tpu.memory_space<vmem>>, vector<128x1xf32>
      %cst_10 = arith.constant 1.000000e+00 : f32
      %14 = vector.broadcast %cst_10 : f32 to vector<128x1xf32>
      %15 = arith.addf %13, %14 : vector<128x1xf32>
      %16 = math.rsqrt %15 : vector<128x1xf32>
      %c0_11 = arith.constant 0 : index
      %c0_12 = arith.constant 0 : index
      %17 = vector.load %arg3[%c0_11, %c0_12] : memref<128x1xf32, #tpu.memory_space<vmem>>, vector<128x1xf32>
      tpu.vector_store %arg3[%c0_11, %c0_12], %16 {strides = array<i32>} : memref<128x1xf32, #tpu.memory_space<vmem>>, vector<128x1xf32>,
    } else {
    }
    return
  }
  func.func @transform_0(%arg0: i32, %arg1: i32) -> (i32, i32) {
    %c0_i32 = arith.constant 0 : i32
    return %arg0, %arg1 : i32, i32
  }
  func.func @transform_1(%arg0: i32, %arg1: i32) -> (i32, i32) {
    %c0_i32 = arith.constant 0 : i32
    %c0_i32_0 = arith.constant 0 : i32
    return %arg0, %c0_i32 : i32, i32
  }
}

</mosaic_0001>

<bundles_post_ra>
// kernel: tpu_custom_call.1
= control target key start
LH: loop header
LB: loop body
LE: loop exit
PB: predicated region body
PF: predicated region fallthrough
CT: control target
= control target key end

     0   :  { %6 = vsyncpa [#allocation4], 0  ;;  %s325_s6 = smov [#allocation3]   ;;  %s438_s0 = inlined_call_operand.hbm [shape: bf16[128,128], index: 0, kind: input, shape index: {}]   ;;  %s439_s1 = inlined_call_operand.vmem [shape: f32[128,1], index: 1, kind: output, shape index: {}]  }
   0x1   :  { %s12_s7 = sshll.u32 %s325_s6, 4  ;;  %s13_s7 = int_to_ptr.vmem [resolvable:$true] %s12_s7 }
   0x2   :  { %s311_s8 = scalar_lea.vmem %s13_s7, 1024  ;;  %p316_p1 = scmp.lt.s32.totalorder %s13_s7, %s13_s7 }
   0x3   :  { %p312_p0 = scmp.ne.s32.totalorder %s13_s7, %s311_s8  ;;  %p317_p2 = scmp.lt.s32.totalorder %s311_s8, %s311_s8 }
   0x5   :  { %p318_p3 = por %p317_p2, %p316_p1 }
   0x7   :  { %p319_p4 = pnand %p318_p3, %p312_p0 }
   0x9   :  { %322 = shalt.err (!%p319_p4)
}
   0xa   :  { %s326_s9 = smov 64   ;;  %s327_s10 = smov 4  }
   0xb   :  { %18 = dma.hbm_to_vmem [thread:$0]  %s438_s0, 1024, %s13_s7, [#allocation4], %s326_s9, %s326_s9, %s327_s10  }
   0xc   :  { %323 = dma.done.wait [#allocation4], 1024  }
   0xd   :  { %324 = vsyncadd [#allocation4], 4294966272  ;;  %vm26_vm0 = vcmask 7168   ;;  %v328_v0 = vmov 0.0   ;;  %v260_v1 = vld [vmem:[#allocation3 + $0x8] sm:$0xff]   ;;  %v229_v2 = vld [vmem:[#allocation3] sm:$0xff]  }
   0xe   :  { %29 = vst.msk [vmem:[#allocation2 + $0x10] sm:$0xff] %vm26_vm0, %v328_v0  ;;  %27 = vst.msk [vmem:[#allocation2] sm:$0xff] %vm26_vm0, %v328_v0  ;;  %v234_v3 = vunpack.c.l.bf16 %v260_v1  ;;  %v230_v4 = vunpack.c.l.bf16 %v229_v2  ;;  %v235_v5 = vunpack.c.h.bf16 %v260_v1  ;;  %v231_v6 = vunpack.c.h.bf16 %v229_v2  ;;  %v261_v7 = vld [vmem:[#allocation3 + $0x10] sm:$0xff]   ;;  %v262_v10 = vld [vmem:[#allocation3 + $0x18] sm:$0xff]  }
   0xf   :  { %28 = vst.msk [vmem:[#allocation2 + $0x8] sm:$0xff] %vm26_vm0, %v328_v0  ;;  %30 = vst.msk [vmem:[#allocation2 + $0x18] sm:$0xff] %vm26_vm0, %v328_v0  ;;  %v239_v8 = vunpack.c.h.bf16 %v261_v7  ;;  %v238_v9 = vunpack.c.l.bf16 %v261_v7  ;;  %v243_v11 = vunpack.c.h.bf16 %v262_v10  ;;  %v242_v12 = vunpack.c.l.bf16 %v262_v10  ;;  %v263_v13 = vld [vmem:[#allocation3 + $0x20] sm:$0xff]   ;;  %v264_v16 = vld [vmem:[#allocation3 + $0x28] sm:$0xff]  }
  0x10   :  { %31 = vst.msk [vmem:[#allocation2 + $0x20] sm:$0xff] %vm26_vm0, %v328_v0  ;;  %32 = vst.msk [vmem:[#allocation2 + $0x28] sm:$0xff] %vm26_vm0, %v328_v0  ;;  %95 = vadd.xlane.f32.xlu1 %v234_v3  ;;  %91 = vadd.xlane.f32.xlu0 %v230_v4  ;;  %v247_v14 = vunpack.c.h.bf16 %v263_v13  ;;  %v246_v15 = vunpack.c.l.bf16 %v263_v13  ;;  %v251_v17 = vunpack.c.h.bf16 %v264_v16  ;;  %v250_v18 = vunpack.c.l.bf16 %v264_v16  ;;  %v265_v19 = vld [vmem:[#allocation3 + $0x30] sm:$0xff]   ;;  %v266_v22 = vld [vmem:[#allocation3 + $0x38] sm:$0xff]  }
  0x11   :  { %33 = vst.msk [vmem:[#allocation2 + $0x30] sm:$0xff] %vm26_vm0, %v328_v0  ;;  %34 = vst.msk [vmem:[#allocation2 + $0x38] sm:$0xff] %vm26_vm0, %v328_v0  ;;  %v255_v20 = vunpack.c.h.bf16 %v265_v19  ;;  %v254_v21 = vunpack.c.l.bf16 %v265_v19  ;;  %v259_v23 = vunpack.c.h.bf16 %v266_v22  ;;  %v258_v24 = vunpack.c.l.bf16 %v266_v22 }
  0x12   :  { %35 = vst.msk [vmem:[#allocation2 + $0x40] sm:$0xff] %vm26_vm0, %v328_v0  ;;  %36 = vst.msk [vmem:[#allocation2 + $0x48] sm:$0xff] %vm26_vm0, %v328_v0 }
  0x13   :  { %37 = vst.msk [vmem:[#allocation2 + $0x50] sm:$0xff] %vm26_vm0, %v328_v0  ;;  %38 = vst.msk [vmem:[#allocation2 + $0x58] sm:$0xff] %vm26_vm0, %v328_v0 }
  0x14   :  { %39 = vst.msk [vmem:[#allocation2 + $0x60] sm:$0xff] %vm26_vm0, %v328_v0  ;;  %40 = vst.msk [vmem:[#allocation2 + $0x68] sm:$0xff] %vm26_vm0, %v328_v0  ;;  %97 = vadd.xlane.f32.xlu1 %v235_v5  ;;  %93 = vadd.xlane.f32.xlu0 %v231_v6 }
  0x15   :  { %41 = vst.msk [vmem:[#allocation2 + $0x70] sm:$0xff] %vm26_vm0, %v328_v0  ;;  %42 = vst.msk [vmem:[#allocation2 + $0x78] sm:$0xff] %vm26_vm0, %v328_v0  ;;  %v45_v25 = vld [vmem:[#allocation2 + $0x10] sm:$0xff]  ;;  %v43_v26 = vld [vmem:[#allocation2] sm:$0xff] }
  0x16   :  { %v46_v31 = vld [vmem:[#allocation2 + $0x18] sm:$0xff]  ;;  %v44_v32 = vld [vmem:[#allocation2 + $0x8] sm:$0xff] }
  0x17   :  { %v48_v37 = vld [vmem:[#allocation2 + $0x28] sm:$0xff]  ;;  %v47_v38 = vld [vmem:[#allocation2 + $0x20] sm:$0xff] }
  0x18   :  { %101 = vadd.xlane.f32.xlu1 %v239_v8  ;;  %99 = vadd.xlane.f32.xlu0 %v238_v9  ;;  %v50_v43 = vld [vmem:[#allocation2 + $0x38] sm:$0xff]  ;;  %v49_v46 = vld [vmem:[#allocation2 + $0x30] sm:$0xff] }
  0x19   :  { %v52_v53 = vld [vmem:[#allocation2 + $0x48] sm:$0xff]  ;;  %v51_v56 = vld [vmem:[#allocation2 + $0x40] sm:$0xff] }
  0x1a   :  { %v54_v63 = vld [vmem:[#allocation2 + $0x58] sm:$0xff]  ;;  %v53_v2 = vld [vmem:[#allocation2 + $0x50] sm:$0xff] }
  0x1b   :  { %v56_v9 = vld [vmem:[#allocation2 + $0x68] sm:$0xff] }
  0x1c   :  { %105 = vadd.xlane.f32.xlu1 %v243_v11  ;;  %103 = vadd.xlane.f32.xlu0 %v242_v12  ;;  %v55_v12 = vld [vmem:[#allocation2 + $0x60] sm:$0xff]  ;;  %v58_v19 = vld [vmem:[#allocation2 + $0x78] sm:$0xff] }
  0x20   :  { %109 = vadd.xlane.f32.xlu1 %v247_v14  ;;  %107 = vadd.xlane.f32.xlu0 %v246_v15 }
  0x24   :  { %113 = vadd.xlane.f32.xlu1 %v251_v17  ;;  %111 = vadd.xlane.f32.xlu0 %v250_v18 }
  0x28   :  { %117 = vadd.xlane.f32.xlu1 %v255_v20  ;;  %115 = vadd.xlane.f32.xlu0 %v254_v21 }
  0x2c   :  { %121 = vadd.xlane.f32.xlu1 %v259_v23  ;;  %119 = vadd.xlane.f32.xlu0 %v258_v24  ;;  %v57_v23 = vld [vmem:[#allocation2 + $0x70] sm:$0xff] }
  0x99   :  { %v96_v27 = vpop.xlane.xlu1 %95  ;;  %v92_v28 = vpop.xlane.xlu0 %91 }
  0x9a   :  { %v125_v29 = vadd.f32 %v96_v27, %v45_v25  ;;  %v123_v30 = vadd.f32 %v92_v28, %v43_v26 }
  0x9c   :  { %142 = vst.msk [vmem:[#allocation2 + $0x10] sm:$0xff] %vm26_vm0, %v125_v29  ;;  %140 = vst.msk [vmem:[#allocation2] sm:$0xff] %vm26_vm0, %v123_v30 }
  0x9d   :  { %v98_v33 = vpop.xlane.xlu1 %97  ;;  %v94_v34 = vpop.xlane.xlu0 %93 }
  0x9e   :  { %v126_v35 = vadd.f32 %v98_v33, %v46_v31  ;;  %v124_v36 = vadd.f32 %v94_v34, %v44_v32 }
  0xa0   :  { %143 = vst.msk [vmem:[#allocation2 + $0x18] sm:$0xff] %vm26_vm0, %v126_v35  ;;  %141 = vst.msk [vmem:[#allocation2 + $0x8] sm:$0xff] %vm26_vm0, %v124_v36 }
  0xa1   :  { %v102_v39 = vpop.xlane.xlu1 %101  ;;  %v100_v40 = vpop.xlane.xlu0 %99 }
  0xa2   :  { %v128_v41 = vadd.f32 %v102_v39, %v48_v37  ;;  %v127_v42 = vadd.f32 %v100_v40, %v47_v38 }
  0xa3   :  { %v161_v44 = vld [vmem:[#allocation2 + $0x10] sm:$0xff]  ;;  %v159_v45 = vld [vmem:[#allocation2] sm:$0xff] }
  0xa4   :  { %v177_v47 = vadd.f32 1.0, %v161_v44  ;;  %v175_v48 = vadd.f32 1.0, %v159_v45  ;;  %145 = vst.msk [vmem:[#allocation2 + $0x28] sm:$0xff] %vm26_vm0, %v128_v41  ;;  %144 = vst.msk [vmem:[#allocation2 + $0x20] sm:$0xff] %vm26_vm0, %v127_v42 }
  0xa5   :  { %v106_v49 = vpop.xlane.xlu1 %105  ;;  %v104_v50 = vpop.xlane.xlu0 %103 }
  0xa6   :  { %271 = vrsqrt.f32 %v177_v47  ;;  %v130_v51 = vadd.f32 %v106_v49, %v50_v43  ;;  %v129_v52 = vadd.f32 %v104_v50, %v49_v46 }
  0xa7   :  { %273 = vrsqrt.f32 %v175_v48  ;;  %v162_v54 = vld [vmem:[#allocation2 + $0x18] sm:$0xff]  ;;  %v160_v55 = vld [vmem:[#allocation2 + $0x8] sm:$0xff] }
  0xa8   :  { %v178_v57 = vadd.f32 1.0, %v162_v54  ;;  %v176_v58 = vadd.f32 1.0, %v160_v55  ;;  %147 = vst.msk [vmem:[#allocation2 + $0x38] sm:$0xff] %vm26_vm0, %v130_v51  ;;  %146 = vst.msk [vmem:[#allocation2 + $0x30] sm:$0xff] %vm26_vm0, %v129_v52 }
  0xa9   :  { %v110_v59 = vpop.xlane.xlu1 %109  ;;  %v108_v60 = vpop.xlane.xlu0 %107 }
  0xaa   :  { %275 = vrsqrt.f32 %v178_v57  ;;  %v132_v61 = vadd.f32 %v110_v59, %v52_v53  ;;  %v131_v62 = vadd.f32 %v108_v60, %v51_v56 }
  0xab   :  { %277 = vrsqrt.f32 %v176_v58  ;;  %v164_v0 = vld [vmem:[#allocation2 + $0x28] sm:$0xff]  ;;  %v163_v1 = vld [vmem:[#allocation2 + $0x20] sm:$0xff] }
  0xac   :  { %v180_v3 = vadd.f32 1.0, %v164_v0  ;;  %v179_v4 = vadd.f32 1.0, %v163_v1  ;;  %149 = vst.msk [vmem:[#allocation2 + $0x48] sm:$0xff] %vm26_vm0, %v132_v61  ;;  %148 = vst.msk [vmem:[#allocation2 + $0x40] sm:$0xff] %vm26_vm0, %v131_v62 }
  0xad   :  { %v114_v5 = vpop.xlane.xlu1 %113  ;;  %v112_v6 = vpop.xlane.xlu0 %111 }
  0xae   :  { %279 = vrsqrt.f32 %v180_v3  ;;  %v134_v7 = vadd.f32 %v114_v5, %v54_v63  ;;  %v133_v8 = vadd.f32 %v112_v6, %v53_v2 }
  0xaf   :  { %281 = vrsqrt.f32 %v179_v4  ;;  %v166_v10 = vld [vmem:[#allocation2 + $0x38] sm:$0xff]  ;;  %v165_v11 = vld [vmem:[#allocation2 + $0x30] sm:$0xff] }
  0xb0   :  { %v182_v13 = vadd.f32 1.0, %v166_v10  ;;  %v181_v14 = vadd.f32 1.0, %v165_v11  ;;  %151 = vst.msk [vmem:[#allocation2 + $0x58] sm:$0xff] %vm26_vm0, %v134_v7  ;;  %150 = vst.msk [vmem:[#allocation2 + $0x50] sm:$0xff] %vm26_vm0, %v133_v8 }
  0xb1   :  { %v118_v15 = vpop.xlane.xlu1 %117  ;;  %v116_v16 = vpop.xlane.xlu0 %115 }
  0xb2   :  { %283 = vrsqrt.f32 %v182_v13  ;;  %v136_v17 = vadd.f32 %v118_v15, %v56_v9  ;;  %v135_v18 = vadd.f32 %v116_v16, %v55_v12 }
  0xb3   :  { %v272_v20 = vpop.eup %271  ;;  %285 = vrsqrt.f32 %v181_v14  ;;  %v168_v21 = vld [vmem:[#allocation2 + $0x48] sm:$0xff]  ;;  %v167_v22 = vld [vmem:[#allocation2 + $0x40] sm:$0xff] }
  0xb4   :  { %v274_v24 = vpop.eup %273  ;;  %209 = vst.msk [vmem:[%s439_s1 + $0x10] sm:$0xff] %vm26_vm0, %v272_v20  ;;  %v184_v25 = vadd.f32 1.0, %v168_v21  ;;  %v183_v26 = vadd.f32 1.0, %v167_v22  ;;  %153 = vst.msk [vmem:[#allocation2 + $0x68] sm:$0xff] %vm26_vm0, %v136_v17 }
  0xb5   :  { %152 = vst.msk [vmem:[#allocation2 + $0x60] sm:$0xff] %vm26_vm0, %v135_v18  ;;  %207 = vst.msk [vmem:[%s439_s1] sm:$0xff] %vm26_vm0, %v274_v24  ;;  %v122_v27 = vpop.xlane.xlu1 %121  ;;  %v120_v28 = vpop.xlane.xlu0 %119 }
  0xb6   :  { %287 = vrsqrt.f32 %v184_v25  ;;  %v138_v29 = vadd.f32 %v122_v27, %v58_v19  ;;  %v137_v30 = vadd.f32 %v120_v28, %v57_v23 }
  0xb7   :  { %v276_v31 = vpop.eup %275  ;;  %289 = vrsqrt.f32 %v183_v26  ;;  %v170_v32 = vld [vmem:[#allocation2 + $0x58] sm:$0xff]  ;;  %v169_v33 = vld [vmem:[#allocation2 + $0x50] sm:$0xff] }
  0xb8   :  { %v278_v34 = vpop.eup %277  ;;  %210 = vst.msk [vmem:[%s439_s1 + $0x18] sm:$0xff] %vm26_vm0, %v276_v31  ;;  %v186_v35 = vadd.f32 1.0, %v170_v32  ;;  %v185_v36 = vadd.f32 1.0, %v169_v33  ;;  %155 = vst.msk [vmem:[#allocation2 + $0x78] sm:$0xff] %vm26_vm0, %v138_v29 }
  0xb9   :  { %154 = vst.msk [vmem:[#allocation2 + $0x70] sm:$0xff] %vm26_vm0, %v137_v30  ;;  %208 = vst.msk [vmem:[%s439_s1 + $0x8] sm:$0xff] %vm26_vm0, %v278_v34 }
  0xba   :  { %291 = vrsqrt.f32 %v186_v35 }
  0xbb   :  { %v280_v37 = vpop.eup %279  ;;  %293 = vrsqrt.f32 %v185_v36  ;;  %v172_v38 = vld [vmem:[#allocation2 + $0x68] sm:$0xff] }
  0xbc   :  { %v171_v39 = vld [vmem:[#allocation2 + $0x60] sm:$0xff]  ;;  %v282_v40 = vpop.eup %281  ;;  %212 = vst.msk [vmem:[%s439_s1 + $0x28] sm:$0xff] %vm26_vm0, %v280_v37  ;;  %v188_v41 = vadd.f32 1.0, %v172_v38 }
  0xbd   :  { %v187_v42 = vadd.f32 1.0, %v171_v39  ;;  %211 = vst.msk [vmem:[%s439_s1 + $0x20] sm:$0xff] %vm26_vm0, %v282_v40 }
  0xbe   :  { %295 = vrsqrt.f32 %v188_v41 }
  0xbf   :  { %v284_v43 = vpop.eup %283  ;;  %297 = vrsqrt.f32 %v187_v42  ;;  %v174_v44 = vld [vmem:[#allocation2 + $0x78] sm:$0xff] }
  0xc0   :  { %v173_v45 = vld [vmem:[#allocation2 + $0x70] sm:$0xff]  ;;  %v286_v46 = vpop.eup %285  ;;  %214 = vst.msk [vmem:[%s439_s1 + $0x38] sm:$0xff] %vm26_vm0, %v284_v43  ;;  %v190_v47 = vadd.f32 1.0, %v174_v44 }
  0xc1   :  { %v189_v48 = vadd.f32 1.0, %v173_v45  ;;  %213 = vst.msk [vmem:[%s439_s1 + $0x30] sm:$0xff] %vm26_vm0, %v286_v46 }
  0xc2   :  { %299 = vrsqrt.f32 %v190_v47 }
  0xc3   :  { %v288_v49 = vpop.eup %287  ;;  %301 = vrsqrt.f32 %v189_v48 }
  0xc4   :  { %v290_v50 = vpop.eup %289  ;;  %216 = vst.msk [vmem:[%s439_s1 + $0x48] sm:$0xff] %vm26_vm0, %v288_v49 }
  0xc5   :  { %215 = vst.msk [vmem:[%s439_s1 + $0x40] sm:$0xff] %vm26_vm0, %v290_v50 }
  0xc7   :  { %v292_v51 = vpop.eup %291 }
  0xc8   :  { %v294_v52 = vpop.eup %293  ;;  %218 = vst.msk [vmem:[%s439_s1 + $0x58] sm:$0xff] %vm26_vm0, %v292_v51 }
  0xc9   :  { %217 = vst.msk [vmem:[%s439_s1 + $0x50] sm:$0xff] %vm26_vm0, %v294_v52 }
  0xcb   :  { %v296_v53 = vpop.eup %295 }
  0xcc   :  { %v298_v54 = vpop.eup %297  ;;  %220 = vst.msk [vmem:[%s439_s1 + $0x68] sm:$0xff] %vm26_vm0, %v296_v53 }
  0xcd   :  { %219 = vst.msk [vmem:[%s439_s1 + $0x60] sm:$0xff] %vm26_vm0, %v298_v54 }
  0xcf   :  { %v300_v55 = vpop.eup %299 }
  0xd0   :  { %v302_v56 = vpop.eup %301  ;;  %222 = vst.msk [vmem:[%s439_s1 + $0x78] sm:$0xff] %vm26_vm0, %v300_v55 }
  0xd1   :  { %221 = vst.msk [vmem:[%s439_s1 + $0x70] sm:$0xff] %vm26_vm0, %v302_v56 }
  0xd2   :  { %227 = vsyncpa [#allocation4], 1 }

</bundles_post_ra>
